<compile_context>
chip_gen: v7x
topology: tpu7x:2x2x1
jax: 0.10.0
libtpu: 0.0.40
codegen_flags: <defaults>
</compile_context>

<pallas_src>
import functools
import math

import jax
import jax.numpy as jnp
from jax.experimental import pallas as pl
from jax.experimental.pallas import tpu as pltpu


# ---------------------------------------------------------------------------
# In-kernel helpers (pure functions on values, f32 math)
# ---------------------------------------------------------------------------

def _ln(x, g, b, eps):
    mean = jnp.mean(x, axis=-1, keepdims=True)
    var = jnp.mean(jnp.square(x - mean), axis=-1, keepdims=True)
    return (x - mean) * jax.lax.rsqrt(var + eps) * g + b


# ---------------------------------------------------------------------------
# Embedding LayerNorm kernel
# ---------------------------------------------------------------------------

def _layernorm_kernel(x_ref, g_ref, b_ref, o_ref, *, eps):
    o_ref[...] = _ln(x_ref[...], g_ref[...], b_ref[...], eps).astype(o_ref.dtype)


def layernorm(x, gamma2d, beta2d, eps=1e-12):
    M, H = x.shape
    return pl.pallas_call(
        functools.partial(_layernorm_kernel, eps=eps),
        out_shape=jax.ShapeDtypeStruct((M, H), jnp.float32),
        in_specs=[pl.BlockSpec(memory_space=pltpu.MemorySpace.VMEM)] * 3,
        out_specs=pl.BlockSpec(memory_space=pltpu.MemorySpace.VMEM),
    )(x, gamma2d, beta2d)


# ---------------------------------------------------------------------------
# Full encoder kernel: grid (B, L), hidden state carried in VMEM scratch
# ---------------------------------------------------------------------------

def _encoder_kernel(x_ref, mask_ref,
                    wqkv_ref, bqkv_ref, wo_ref, bo_ref,
                    ln1g_ref, ln1b_ref,
                    w1_ref, b1_ref, w2_ref, b2_ref,
                    ln2g_ref, ln2b_ref,
                    o_ref, h_scr, *, num_heads, head_dim, eps):
    """One BERT encoder layer for one batch element; layers chained via scratch."""
    H = num_heads * head_dim
    l = pl.program_id(1)

    # Load the embedding output into the carried hidden state at layer 0.
    @pl.when(l == 0)
    def _():
        h_scr[...] = x_ref[0]

    x = h_scr[...]                                  # (S, H) f32
    x_bf = x.astype(jnp.bfloat16)

    # --- fused Q/K/V projection: one (S,H)x(H,3H) matmul ---
    qkv = jnp.dot(x_bf, wqkv_ref[0],
                  preferred_element_type=jnp.float32) + bqkv_ref[0]   # (S, 3H) f32

    bias = mask_ref[0]                              # (1, S) additive mask bias
    scale = 1.0 / math.sqrt(head_dim)

    # --- multi-head self attention (heads sliced on the lane axis, static loop) ---
    ctx_heads = []
    for h in range(num_heads):
        q = qkv[:, h * head_dim:(h + 1) * head_dim].astype(jnp.bfloat16)
        k = qkv[:, H + h * head_dim: H + (h + 1) * head_dim].astype(jnp.bfloat16)
        v = qkv[:, 2 * H + h * head_dim: 2 * H + (h + 1) * head_dim].astype(jnp.bfloat16)
        scores = jnp.dot(q, k.T, preferred_element_type=jnp.float32) * scale + bias
        m = jnp.max(scores, axis=-1, keepdims=True)
        p = jnp.exp(scores - m)
        denom = jnp.sum(p, axis=-1, keepdims=True)
        probs = p * pl.reciprocal(denom, approx=True)      # EUP slot, effectively free
        ctx_heads.append(jnp.dot(probs.astype(jnp.bfloat16), v,
                                 preferred_element_type=jnp.float32))
    ctx = jnp.concatenate(ctx_heads, axis=-1)       # (S, H) f32

    # --- output projection + residual + LayerNorm (fused epilogue) ---
    attn_out = jnp.dot(ctx.astype(jnp.bfloat16), wo_ref[0],
                       preferred_element_type=jnp.float32) + bo_ref[0]
    h1 = _ln(x + attn_out, ln1g_ref[0], ln1b_ref[0], eps)

    # --- FFN + residual + LayerNorm (fused epilogue) ---
    ff = jnp.dot(h1.astype(jnp.bfloat16), w1_ref[0],
                 preferred_element_type=jnp.float32) + b1_ref[0]
    # TODO(synk): HF BERT uses exact erf-GELU; tanh approximation kept for robust lowering.
    ff = jax.nn.gelu(ff, approximate=True)
    ff2 = jnp.dot(ff.astype(jnp.bfloat16), w2_ref[0],
                  preferred_element_type=jnp.float32) + b2_ref[0]
    h_new = _ln(h1 + ff2, ln2g_ref[0], ln2b_ref[0], eps)
    h_scr[...] = h_new

    # Store only once the last layer has been applied (output block is resident
    # across the layer axis; single lane-dense write).
    @pl.when(l == pl.num_programs(1) - 1)
    def _():
        o_ref[0] = h_new.astype(o_ref.dtype)


def encoder(x, mask_bias, enc, cfg):
    """x: (B, S, H) f32; mask_bias: (B, 1, S) f32; enc: stacked (L, ...) weights."""
    B, S, H = x.shape
    I = cfg["intermediate"]
    L = cfg["layers"]

    def per_batch(shape):
        return pl.BlockSpec((1,) + shape, lambda b, l, _n=len(shape): (b,) + (0,) * _n)

    def per_layer(shape):
        return pl.BlockSpec((1,) + shape, lambda b, l, _n=len(shape): (l,) + (0,) * _n)

    return pl.pallas_call(
        functools.partial(_encoder_kernel,
                          num_heads=cfg["heads"], head_dim=cfg["head_dim"], eps=1e-12),
        grid=(B, L),
        in_specs=[
            per_batch((S, H)),                     # hidden states (embedding output)
            per_batch((1, S)),                     # per-batch additive mask bias
            per_layer((H, 3 * H)), per_layer((1, 3 * H)),   # wqkv / bqkv
            per_layer((H, H)), per_layer((1, H)),            # wo / bo
            per_layer((1, H)), per_layer((1, H)),            # ln1 gamma / beta
            per_layer((H, I)), per_layer((1, I)),            # w1 / b1
            per_layer((I, H)), per_layer((1, H)),            # w2 / b2
            per_layer((1, H)), per_layer((1, H)),            # ln2 gamma / beta
        ],
        out_specs=pl.BlockSpec((1, S, H), lambda b, l: (b, 0, 0)),
        out_shape=jax.ShapeDtypeStruct((B, S, H), jnp.float32),
        scratch_shapes=[pltpu.VMEM((S, H), jnp.float32)],    # carried hidden state
        compiler_params=pltpu.CompilerParams(
            dimension_semantics=("parallel", "arbitrary"),   # batch parallel, layers serial
            vmem_limit_bytes=32 * 1024 * 1024),
    )(x, mask_bias,
      enc["wqkv"], enc["bqkv"], enc["wo"], enc["bo"],
      enc["ln1_g"], enc["ln1_b"], enc["w1"], enc["b1"], enc["w2"], enc["b2"],
      enc["ln2_g"], enc["ln2_b"])


# ---------------------------------------------------------------------------
# Pooler + classifier head kernel
# ---------------------------------------------------------------------------

def _pooler_classifier_kernel(cls_ref, wp_ref, bp_ref, wc_ref, bc_ref, o_ref):
    cls = cls_ref[...].astype(jnp.bfloat16)                    # (B, H)
    pooled = jnp.tanh(jnp.dot(cls, wp_ref[...],
                              preferred_element_type=jnp.float32) + bp_ref[...])
    # nn.Dropout(p=0.3): identity at inference (eval mode).
    logits = jnp.dot(pooled.astype(jnp.bfloat16), wc_ref[...],
                     preferred_element_type=jnp.float32) + bc_ref[...]
    o_ref[...] = logits                                        # (B, 128) lane-dense store


def pooler_classifier(cls, params, pad_n):
    B, H = cls.shape
    return pl.pallas_call(
        _pooler_classifier_kernel,
        out_shape=jax.ShapeDtypeStruct((B, pad_n), jnp.float32),
        in_specs=[pl.BlockSpec(memory_space=pltpu.MemorySpace.VMEM)] * 5,
        out_specs=pl.BlockSpec(memory_space=pltpu.MemorySpace.VMEM),
    )(cls, params["wp"], params["bp"], params["wc_pad"], params["bc_pad"])


# ---------------------------------------------------------------------------
# Parameter init (deterministic, synthetic)
# ---------------------------------------------------------------------------

def init_params(key, cfg):
    H, I, L = cfg["hidden"], cfg["intermediate"], cfg["layers"]
    V, P, T = cfg["vocab"], cfg["max_pos"], cfg["type_vocab"]
    n_out, pad_n = cfg["num_labels"], cfg["pad_labels"]
    std = 0.02

    def nrm(k, shape):
        return std * jax.random.normal(k, shape, dtype=jnp.float32)

    keys = iter(jax.random.split(key, 16))

    # classifier Linear(H, 5), padded to 128 lanes for unmasked stores
    wc = jnp.zeros((H, pad_n), jnp.float32)
    wc = wc.at[:, :n_out].set(nrm(next(keys), (H, n_out)))

    # per-layer weights stacked on a leading L axis (streamed per grid step)
    kq, kk, kv, ko, k1, k2 = jax.random.split(next(keys), 6)
    wq, wk, wv = nrm(kq, (L, H, H)), nrm(kk, (L, H, H)), nrm(kv, (L, H, H))
    enc = {
        "wqkv": jnp.concatenate([wq, wk, wv], axis=2).astype(jnp.bfloat16),  # (L, H, 3H)
        "bqkv": jnp.zeros((L, 1, 3 * H), jnp.float32),
        "wo": nrm(ko, (L, H, H)).astype(jnp.bfloat16),
        "bo": jnp.zeros((L, 1, H), jnp.float32),
        "ln1_g": jnp.ones((L, 1, H), jnp.float32),
        "ln1_b": jnp.zeros((L, 1, H), jnp.float32),
        "w1": nrm(k1, (L, H, I)).astype(jnp.bfloat16),
        "b1": jnp.zeros((L, 1, I), jnp.float32),
        "w2": nrm(k2, (L, I, H)).astype(jnp.bfloat16),
        "b2": jnp.zeros((L, 1, H), jnp.float32),
        "ln2_g": jnp.ones((L, 1, H), jnp.float32),
        "ln2_b": jnp.zeros((L, 1, H), jnp.float32),
    }

    return {
        # embeddings stay f32 (gather + add done in JAX glue)
        "word_emb": nrm(next(keys), (V, H)),
        "pos_emb": nrm(next(keys), (P, H)),
        "type_emb": nrm(next(keys), (T, H)),
        "emb_ln_g": jnp.ones((1, H), jnp.float32),
        "emb_ln_b": jnp.zeros((1, H), jnp.float32),
        "encoder": enc,
        # pooler dense (bf16 weight, f32 bias)
        "wp": nrm(next(keys), (H, H)).astype(jnp.bfloat16),
        "bp": jnp.zeros((1, H), jnp.float32),
        "wc_pad": wc.astype(jnp.bfloat16),
        "bc_pad": jnp.zeros((1, pad_n), jnp.float32),
    }


# ---------------------------------------------------------------------------
# Forward pass (embedding gather in JAX glue, everything else in Pallas)
# ---------------------------------------------------------------------------

def bert_personality_forward(params, input_ids, attention_mask, cfg):
    B, S = input_ids.shape
    H = cfg["hidden"]

    # --- embeddings (gather kept in plain JAX glue) ---
    emb = (params["word_emb"][input_ids]
           + params["pos_emb"][jnp.arange(S)][None, :, :]
           + params["type_emb"][0][None, None, :])            # token_type_ids = 0
    h = layernorm(emb.reshape(B * S, H),
                  params["emb_ln_g"], params["emb_ln_b"]).reshape(B, S, H)

    # extended attention mask bias, HF-BERT style: (1 - mask) * -10000, shape (B, 1, S)
    mask_bias = ((1.0 - attention_mask.astype(jnp.float32)) * -10000.0).reshape(B, 1, S)

    # --- transformer encoder: ALL layers in one fused pallas_call ---
    h = encoder(h, mask_bias, params["encoder"], cfg)

    # --- pooler (dense + tanh on [CLS]) + dropout(identity) + classifier Linear(H,5) ---
    cls = h[:, 0, :]                                           # (B, H)
    logits_pad = pooler_classifier(cls, params, cfg["pad_labels"])
    return logits_pad[:, :cfg["num_labels"]]                   # (B, 5)


# ---------------------------------------------------------------------------
# Main
# ---------------------------------------------------------------------------

if __name__ == "__main__":
    cfg = dict(hidden=128, heads=2, head_dim=64, intermediate=512,
               layers=2, vocab=128, max_pos=64, type_vocab=2,
               num_labels=5, pad_labels=128)
    B, S = 2, 8

    root = jax.random.PRNGKey(0)
    k_param, k_ids = jax.random.split(root)
    params = init_params(k_param, cfg)

    input_ids = jax.random.randint(k_ids, (B, S), 0, cfg["vocab"], dtype=jnp.int32)
    # second sequence padded (last 3 positions masked out)
    attention_mask = jnp.array(
        [[1, 1, 1, 1, 1, 1, 1, 1],
         [1, 1, 1, 1, 1, 0, 0, 0]], dtype=jnp.int32)

    logits = bert_personality_forward(params, input_ids, attention_mask, cfg)
    logits = jax.block_until_ready(logits)
    assert logits.shape == (B, cfg["num_labels"])
    assert logits.dtype == jnp.float32
    assert bool(jnp.all(jnp.isfinite(logits)))
    print("KERNEL_OK")
</pallas_src>

<mosaic_0001>
module attributes {stable_mosaic.version = 11 : i64} {
  func.func @_layernorm_kernel(%arg0: memref<16x128xf32, #tpu.memory_space<vmem>>, %arg1: memref<1x128xf32, #tpu.memory_space<vmem>>, %arg2: memref<1x128xf32, #tpu.memory_space<vmem>>, %arg3: memref<16x128xf32, #tpu.memory_space<vmem>>) attributes {dimension_semantics = [], scalar_prefetch = 0 : i64, scratch_operands = 0 : i64, tpu.core_type = #tpu.core_type<tc>} {
    %c0 = arith.constant 0 : index
    %c0_0 = arith.constant 0 : index
    %0 = vector.load %arg0[%c0, %c0_0] : memref<16x128xf32, #tpu.memory_space<vmem>>, vector<16x128xf32>
    %c0_1 = arith.constant 0 : index
    %c0_2 = arith.constant 0 : index
    %1 = vector.load %arg1[%c0_1, %c0_2] : memref<1x128xf32, #tpu.memory_space<vmem>>, vector<1x128xf32>
    %c0_3 = arith.constant 0 : index
    %c0_4 = arith.constant 0 : index
    %2 = vector.load %arg2[%c0_3, %c0_4] : memref<1x128xf32, #tpu.memory_space<vmem>>, vector<1x128xf32>
    %cst = arith.constant dense<0.000000e+00> : vector<16xf32>
    %3 = vector.multi_reduction <add>, %0, %cst [1] : vector<16x128xf32> to vector<16xf32>
    %4 = vector.shape_cast %3 : vector<16xf32> to vector<16x1xf32>
    %cst_5 = arith.constant 1.280000e+02 : f32
    %5 = vector.broadcast %cst_5 : f32 to vector<16x1xf32>
    %6 = arith.divf %4, %5 : vector<16x1xf32>
    %7 = vector.broadcast %6 : vector<16x1xf32> to vector<16x128xf32>
    %8 = arith.subf %0, %7 : vector<16x128xf32>
    %9 = arith.mulf %8, %8 : vector<16x128xf32>
    %cst_6 = arith.constant dense<0.000000e+00> : vector<16xf32>
    %10 = vector.multi_reduction <add>, %9, %cst_6 [1] : vector<16x128xf32> to vector<16xf32>
    %11 = vector.shape_cast %10 : vector<16xf32> to vector<16x1xf32>
    %cst_7 = arith.constant 1.280000e+02 : f32
    %12 = vector.broadcast %cst_7 : f32 to vector<16x1xf32>
    %13 = arith.divf %11, %12 : vector<16x1xf32>
    %14 = vector.broadcast %6 : vector<16x1xf32> to vector<16x128xf32>
    %15 = arith.subf %0, %14 : vector<16x128xf32>
    %cst_8 = arith.constant 9.99999996E-13 : f32
    %16 = vector.broadcast %cst_8 : f32 to vector<16x1xf32>
    %17 = arith.addf %13, %16 : vector<16x1xf32>
    %18 = math.rsqrt %17 : vector<16x1xf32>
    %19 = vector.broadcast %18 : vector<16x1xf32> to vector<16x128xf32>
    %20 = arith.mulf %15, %19 : vector<16x128xf32>
    %21 = vector.broadcast %1 : vector<1x128xf32> to vector<16x128xf32>
    %22 = arith.mulf %20, %21 : vector<16x128xf32>
    %23 = vector.broadcast %2 : vector<1x128xf32> to vector<16x128xf32>
    %24 = arith.addf %22, %23 : vector<16x128xf32>
    %c0_9 = arith.constant 0 : index
    %c0_10 = arith.constant 0 : index
    %25 = vector.load %arg3[%c0_9, %c0_10] : memref<16x128xf32, #tpu.memory_space<vmem>>, vector<16x128xf32>
    tpu.vector_store %arg3[%c0_9, %c0_10], %24 {strides = array<i32>} : memref<16x128xf32, #tpu.memory_space<vmem>>, vector<16x128xf32>,
    return
  }
}

</mosaic_0001>

<bundles_post_ra>
// kernel: tpu_custom_call.1
= control target key start
LH: loop header
LB: loop body
LE: loop exit
PB: predicated region body
PF: predicated region fallthrough
CT: control target
= control target key end

     0   :  { %8 = vsyncpa [#allocation3], 0  ;;  %s209_s0 = inlined_call_operand.hbm [shape: f32[16,128], index: 0, kind: input, shape index: {}]   ;;  %s210_s1 = inlined_call_operand.vmem [shape: f32[1,128], index: 1, kind: input, shape index: {}]   ;;  %s211_s2 = inlined_call_operand.vmem [shape: f32[1,128], index: 2, kind: input, shape index: {}]   ;;  %s212_s3 = inlined_call_operand.hbm [shape: f32[16,128], index: 3, kind: output, shape index: {}]  }
   0x1   :  { %9 = vsyncpa [#allocation4], 0  ;;  %s149_s12 = smov [#allocation2]   ;;  %s101_s16 = scalar_lea.hbm %s209_s0, 256 }
   0x2   :  { %s15_s13 = sshll.u32 %s149_s12, 4  ;;  %p102_p0 = scmp.ne.s32.totalorder %s209_s0, %s101_s16  ;;  %s16_s13 = int_to_ptr.vmem [resolvable:$true] %s15_s13 }
   0x3   :  { %p105_p1 = scmp.lt.u32.totalorder %s101_s16, %s209_s0 }
   0x5   :  { %p107_p2 = pnand %p105_p1, %p102_p0 }
   0x7   :  { %110 = shalt.err (!%p107_p2)
}
   0x8   :  { %s111_s21 = scalar_lea.vmem %s16_s13, 256  ;;  %p116_p4 = scmp.lt.s32.totalorder %s16_s13, %s16_s13 }
   0x9   :  { %p112_p3 = scmp.ne.s32.totalorder %s16_s13, %s111_s21  ;;  %p117_p5 = scmp.lt.s32.totalorder %s111_s21, %s111_s21 }
   0xb   :  { %p118_p6 = por %p117_p5, %p116_p4 }
   0xd   :  { %p119_p7 = pnand %p118_p6, %p112_p3 }
   0xf   :  { %122 = shalt.err (!%p119_p7)
}
  0x10   :  { %s150_s22 = smov 128   ;;  %s151_s23 = smov 8  }
  0x11   :  { %21 = dma.hbm_to_vmem [thread:$0]  %s209_s0, 256, %s16_s13, [#allocation3], %s150_s22, %s150_s22, %s151_s23  }
  0x12   :  { %145 = dma.done.wait [#allocation3], 256  }
  0x13   :  { %146 = vsyncadd [#allocation3], 4294967040  ;;  %v29_v0 = vld [vmem:[#allocation2] sm:$0xff]  ;;  %v30_v1 = vld [vmem:[#allocation2 + $0x8] sm:$0xff]  ;;  %s152_s29 = smov [#allocation5]  }
  0x14   :  { %33 = vadd.xlane.f32.xlu0 %v29_v0  ;;  %v91_v17 = vld [vmem:[%s210_s1] ss:$0 sm:$0xff]  ;;  %s79_s30 = sshll.u32 %s152_s29, 4  ;;  %s80_s30 = int_to_ptr.vmem [resolvable:$true] %s79_s30 }
  0x15   :  { %v92_v19 = vld [vmem:[%s211_s2] ss:$0 sm:$0xff]  ;;  %s123_s4 = scalar_lea.vmem %s80_s30, 256  ;;  %p128_p9 = scmp.lt.s32.totalorder %s80_s30, %s80_s30 }
  0x16   :  { %p124_p8 = scmp.ne.s32.totalorder %s80_s30, %s123_s4  ;;  %p129_p10 = scmp.lt.s32.totalorder %s123_s4, %s123_s4 }
  0x18   :  { %35 = vadd.xlane.f32.xlu0 %v30_v1  ;;  %p130_p11 = por %p129_p10, %p128_p9 }
  0x1a   :  { %p131_p12 = pnand %p130_p11, %p124_p8 }
  0xa1   :  { %v34_v2 = vpop.xlane.xlu0 %33 }
  0xa2   :  { %v38_v3 = vmul.f32 0.0078125, %v34_v2 }
  0xa4   :  { %v40_v4 = vsub.f32 %v29_v0, %v38_v3 }
  0xa5   :  { %v36_v5 = vpop.xlane.xlu0 %35 }
  0xa6   :  { %v39_v6 = vmul.f32 0.0078125, %v36_v5  ;;  %v42_v7 = vmul.f32 %v40_v4, %v40_v4 }
  0xa8   :  { %v41_v8 = vsub.f32 %v30_v1, %v39_v6  ;;  %44 = vadd.xlane.f32.xlu1 %v42_v7 }
  0xaa   :  { %v43_v9 = vmul.f32 %v41_v8, %v41_v8 }
  0xac   :  { %46 = vadd.xlane.f32.xlu1 %v43_v9 }
 0x135   :  { %v45_v10 = vpop.xlane.xlu1 %44 }
 0x136   :  { %v48_v11 = vmul.f32 0.0078125, %v45_v10 }
 0x138   :  { %v50_v12 = vadd.f32 1e-12, %v48_v11 }
 0x139   :  { %v47_v13 = vpop.xlane.xlu1 %46 }
 0x13a   :  { %97 = vrsqrt.f32 %v50_v12  ;;  %v49_v14 = vmul.f32 0.0078125, %v47_v13 }
 0x13c   :  { %v51_v15 = vadd.f32 1e-12, %v49_v14 }
 0x13e   :  { %99 = vrsqrt.f32 %v51_v15 }
 0x144   :  { %v98_v16 = vpop.eup %97 }
 0x145   :  { %v54_v18 = vmul.f32 %v98_v16, %v40_v4 }
 0x147   :  { %v62_v20 = vmul.f32 %v91_v17, %v54_v18 }
 0x148   :  { %v100_v21 = vpop.eup %99 }
 0x149   :  { %v55_v22 = vmul.f32 %v100_v21, %v41_v8  ;;  %v70_v23 = vadd.f32 %v92_v19, %v62_v20 }
 0x14b   :  { %v63_v24 = vmul.f32 %v91_v17, %v55_v22  ;;  %72 = vst [vmem:[#allocation5] sm:$0xff] %v70_v23 }
 0x14d   :  { %v71_v25 = vadd.f32 %v92_v19, %v63_v24 }
 0x14f   :  { %73 = vst [vmem:[#allocation5 + $0x8] sm:$0xff] %v71_v25 }
 0x150   :  { %134 = shalt.err (!%p131_p12)
}
 0x151   :  { %s135_s5 = scalar_lea.hbm %s212_s3, 256 }
 0x152   :  { %p136_p13 = scmp.ne.s32.totalorder %s212_s3, %s135_s5  ;;  %p139_p0 = scmp.lt.u32.totalorder %s135_s5, %s212_s3 }
 0x154   :  { %p141_p1 = pnand %p139_p0, %p136_p13 }
 0x156   :  { %144 = shalt.err (!%p141_p1)
}
 0x157   :  { %85 = dma.vmem_to_hbm [thread:$0]  %s80_s30, 256, %s212_s3, [#allocation4], %s150_s22, %s150_s22, %s151_s23  }
 0x158   :  { %147 = dma.done.wait [#allocation4], 256  }
 0x159   :  { %148 = vsyncadd [#allocation4], 4294967040 }
 0x15a   :  { %89 = vsyncpa [#allocation3], 1 }
 0x15b   :  { %90 = vsyncpa [#allocation4], 1 }

</bundles_post_ra>
